<compile_context>
chip_gen: v5e
topology: v5e:2x2
jax: 0.10.0
libtpu: 0.0.40
codegen_flags: <defaults>
</compile_context>

<pallas_src>
import functools
import math

import jax
import jax.numpy as jnp
from jax import lax
from jax.experimental import pallas as pl
from jax.experimental.pallas import tpu as pltpu

# ~2 MiB per pipeline buffer => x(2x) + out(2x) + pe(2x) stays well under the
# 32 MiB scoped-VMEM limit (and v7x's 64 MiB physical VMEM).
_TILE_TARGET_BYTES = 2 * 1024 * 1024
_VMEM_LIMIT_BYTES = 32 * 1024 * 1024


def _i32(v):
    """Python int -> wrapped int32 constant (for hash constants >= 2**31)."""
    v &= 0xFFFFFFFF
    if v >= 1 << 31:
        v -= 1 << 32
    return jnp.int32(v)


def _srl(x, n):
    """Logical right shift for int32 (arithmetic shift + mask of sign bits)."""
    return (x >> n) & jnp.int32((1 << (32 - n)) - 1)


def _hash_keep(elem_idx, batch_idx, seed, thresh):
    """Stateless lowbias32 hash of (elem, batch, seed) -> bool keep mask.

    thresh is a Python int in [0, 2**23]; keep probability = 1 - thresh/2**23.
    """
    h = elem_idx ^ (batch_idx * _i32(0x9E3779B9)) ^ (seed * _i32(0x85EBCA6B))
    h = h ^ _srl(h, 16)
    h = h * _i32(0x7FEB352D)
    h = h ^ _srl(h, 15)
    h = h * _i32(0x846CA68B)
    h = h ^ _srl(h, 16)
    return _srl(h, 9) >= jnp.int32(thresh)   # top 23 bits: uniform in [0, 2^23)


def _posenc_flat_kernel(seed_ref, x_ref, pe_ref, o_ref, *,
                        thresh, scale, apply_dropout):
    """Flattened path. x_ref/o_ref: (TB, TC); pe_ref: (1, TC); seed_ref: SMEM (1,)."""
    y = x_ref[...] + pe_ref[...]                      # (TB, TC) + (1, TC) broadcast
    if apply_dropout:
        tb, tc = x_ref.shape
        c0 = pl.program_id(0) * tc                    # feature-tile offset
        b0 = pl.program_id(1) * tb                    # batch-tile offset
        col = lax.broadcasted_iota(jnp.int32, (tb, tc), 1)
        row = lax.broadcasted_iota(jnp.int32, (tb, tc), 0)
        keep = _hash_keep(c0 + col, b0 + row, seed_ref[0], thresh)
        s = jnp.asarray(scale, y.dtype)
        y = y * jnp.where(keep, s, jnp.zeros_like(s))  # single select + multiply
    o_ref[...] = y.astype(o_ref.dtype)


def _posenc_3d_kernel(seed_ref, x_ref, pe_ref, o_ref, *,
                      thresh, scale, apply_dropout):
    """Fallback path. x_ref/pe_ref/o_ref: (TS, D) tiles (batch dim squeezed)."""
    y = x_ref[...] + pe_ref[...]
    if apply_dropout:
        ts, d = x_ref.shape
        s_tile = pl.program_id(0)                     # sequence-tile index
        b = pl.program_id(1)                          # batch index (block == element)
        row = lax.broadcasted_iota(jnp.int32, (ts, d), 0)
        col = lax.broadcasted_iota(jnp.int32, (ts, d), 1)
        elem = (s_tile * ts + row) * d + col          # flat index within one batch item
        keep = _hash_keep(elem, b, seed_ref[0], thresh)
        s = jnp.asarray(scale, y.dtype)
        y = y * jnp.where(keep, s, jnp.zeros_like(s))
    o_ref[...] = y.astype(o_ref.dtype)


def make_positional_table(max_len, d_model, dtype=jnp.float32):
    """Same construction as the PyTorch __init__ (before the transpose dance)."""
    position = jnp.arange(max_len, dtype=jnp.float32)[:, None]
    div_term = jnp.exp(jnp.arange(0, d_model, 2, dtype=jnp.float32)
                       * (-math.log(10000.0) / d_model))
    pe = jnp.zeros((max_len, d_model), jnp.float32)
    pe = pe.at[:, 0::2].set(jnp.sin(position * div_term))
    pe = pe.at[:, 1::2].set(jnp.cos(position * div_term))
    return pe.astype(dtype)


def positional_encoding(x, pe_full, seed, *, p_drop=0.1, training=True):
    """x: (B, S, D). pe_full: (max_len, D). Returns dropout(x + pe[:S])."""
    B, S, D = x.shape
    max_len, d_pe = pe_full.shape
    assert d_pe == D and S <= max_len
    out_dtype = jnp.result_type(x.dtype, pe_full.dtype)

    if training and p_drop >= 1.0:                    # nn.Dropout(p=1): drop all
        return jnp.zeros((B, S, D), out_dtype)

    apply_dropout = bool(training) and float(p_drop) > 0.0
    # TODO(synk): keep-prob / 1/(1-p) scaling matches nn.Dropout, but not
    # torch's exact RNG bitstream (stateless hash instead).
    thresh = int(round(float(p_drop) * (1 << 23)))    # drop iff bits23 < thresh
    scale = 1.0 / (1.0 - float(p_drop)) if apply_dropout else 1.0

    itemsize = jnp.dtype(out_dtype).itemsize
    sub = 8 if itemsize >= 4 else 16                  # sublane granule (f32 / bf16)

    seed_arr = jnp.asarray([seed], jnp.int32)
    compiler_params = pltpu.CompilerParams(
        # Stateless hash PRNG -> every grid step independent; lets Mosaic shard
        # the grid across both TensorCores on v7x.
        dimension_semantics=("parallel", "parallel"),
        vmem_limit_bytes=_VMEM_LIMIT_BYTES,
    )

    C = S * D
    if C % 128 == 0:
        # ---- Lane-dense fast path: flatten to (B, S*D) ---------------------
        x2 = x.reshape(B, C)                          # contiguous -> free reshape
        pe2 = pe_full[:S, :].reshape(1, C)            # tiny (S*D) copy, reused per tile
        tc = min(C, max(128,
                        (_TILE_TARGET_BYTES // max(1, sub * itemsize)) // 128 * 128))
        tb_cap = max(sub,
                     (_TILE_TARGET_BYTES // max(1, tc * itemsize)) // sub * sub)
        tb = B if B <= tb_cap else tb_cap
        n_c = pl.cdiv(C, tc)
        n_b = pl.cdiv(B, tb)

        kernel = functools.partial(_posenc_flat_kernel, thresh=thresh, scale=scale,
                                   apply_dropout=apply_dropout)
        out2 = pl.pallas_call(
            kernel,
            out_shape=jax.ShapeDtypeStruct((B, C), out_dtype),
            grid_spec=pltpu.PrefetchScalarGridSpec(
                num_scalar_prefetch=1,                # seed lands in SMEM
                # feature-tile outer, batch inner: the PE block index is constant
                # along the inner axis, so the (1, tc) PE tile is fetched once per
                # feature tile and reused for every batch block.
                grid=(n_c, n_b),
                in_specs=[
                    pl.BlockSpec((tb, tc), lambda c, b, seed_ref: (b, c)),   # x
                    pl.BlockSpec((1, tc), lambda c, b, seed_ref: (0, c)),    # pe row
                ],
                out_specs=pl.BlockSpec((tb, tc), lambda c, b, seed_ref: (b, c)),
            ),
            compiler_params=compiler_params,
        )(seed_arr, x2, pe2)
        return out2.reshape(B, S, D)

    # ---- General fallback: keep (B, S, D), tile the sequence ---------------
    rows = max(sub, (_TILE_TARGET_BYTES // max(1, D * itemsize)) // sub * sub)
    pe_in = pe_full
    if S <= rows:
        ts = S                                        # whole sequence in one block
        if S % sub != 0:
            pe_in = pe_full[:S, :]                    # ragged S: block == full array dims
    else:
        ts = rows                                     # multiple of `sub`
    n_s = pl.cdiv(S, ts)

    kernel = functools.partial(_posenc_3d_kernel, thresh=thresh, scale=scale,
                               apply_dropout=apply_dropout)
    return pl.pallas_call(
        kernel,
        out_shape=jax.ShapeDtypeStruct((B, S, D), out_dtype),
        grid_spec=pltpu.PrefetchScalarGridSpec(
            num_scalar_prefetch=1,
            # seq-tile outer, batch inner: PE tile fetched once per seq-tile,
            # reused across the batch.
            grid=(n_s, B),
            in_specs=[
                pl.BlockSpec((None, ts, D), lambda s, b, seed_ref: (b, s, 0)),  # x
                pl.BlockSpec((ts, D), lambda s, b, seed_ref: (s, 0)),           # pe rows
            ],
            out_specs=pl.BlockSpec((None, ts, D), lambda s, b, seed_ref: (b, s, 0)),
        ),
        compiler_params=compiler_params,
    )(seed_arr, x, pe_in)


if __name__ == "__main__":
    B, S, D = 2, 8, 32
    MAX_LEN = 5000
    P_DROP = 0.1

    key = jax.random.PRNGKey(0)
    x = jax.random.normal(key, (B, S, D), dtype=jnp.float32)
    pe_full = make_positional_table(MAX_LEN, D)
    ref = x + pe_full[:S, :][None, :, :]

    # Eval mode (dropout is identity): must match x + pe[:S] exactly.
    out_eval = jax.block_until_ready(
        positional_encoding(x, pe_full, seed=0, p_drop=P_DROP, training=False))
    assert out_eval.shape == (B, S, D)
    assert jnp.allclose(out_eval, ref, atol=1e-6), "eval-mode mismatch"

    # Train mode (inverted dropout): every element is either exactly 0 (dropped)
    # or (x + pe) / (1 - p) (kept), and most elements are kept for p = 0.1.
    out_train = jax.block_until_ready(
        positional_encoding(x, pe_full, seed=1234, p_drop=P_DROP, training=True))
    assert out_train.shape == (B, S, D)
    scaled = ref / (1.0 - P_DROP)
    ok = jnp.isclose(out_train, scaled, rtol=1e-5, atol=1e-6) | (out_train == 0)
    assert bool(jnp.all(ok)), "train-mode values must be 0 or (x+pe)/(1-p)"
    keep_frac = float(jnp.mean((out_train != 0).astype(jnp.float32)))
    assert 0.5 < keep_frac <= 1.0, f"unexpected keep fraction {keep_frac}"

    # Exercise the non-lane-aligned fallback path (S*D not a multiple of 128).
    B2, S2, D2 = 2, 5, 24
    x2 = jax.random.normal(jax.random.PRNGKey(1), (B2, S2, D2), dtype=jnp.float32)
    pe2 = make_positional_table(64, D2)
    out2 = jax.block_until_ready(
        positional_encoding(x2, pe2, seed=0, p_drop=P_DROP, training=False))
    ref2 = x2 + pe2[:S2, :][None, :, :]
    assert jnp.allclose(out2, ref2, atol=1e-6), "fallback-path mismatch"

    print("KERNEL_OK")
</pallas_src>

<mosaic_0001>
module attributes {stable_mosaic.version = 11 : i64} {
  func.func @_posenc_flat_kernel(%arg0: i32, %arg1: i32, %arg2: memref<1xi32, #tpu.memory_space<smem>>, %arg3: memref<2x256xf32, #tpu.memory_space<vmem>>, %arg4: memref<1x256xf32, #tpu.memory_space<vmem>>, %arg5: memref<2x256xf32, #tpu.memory_space<vmem>>) attributes {dimension_semantics = [#tpu.dimension_semantics<parallel>, #tpu.dimension_semantics<parallel>], iteration_bounds = array<i64: 1, 1>, scalar_prefetch = 1 : i64, scratch_operands = 0 : i64, tpu.core_type = #tpu.core_type<tc>, window_params = [{transform_indices = @transform_0, window_bounds = array<i64: 2, 256>}, {transform_indices = @transform_1, window_bounds = array<i64: 1, 256>}, {transform_indices = @transform_2, window_bounds = array<i64: 2, 256>}]} {
    %c0 = arith.constant 0 : index
    %c0_0 = arith.constant 0 : index
    %0 = vector.load %arg3[%c0, %c0_0] : memref<2x256xf32, #tpu.memory_space<vmem>>, vector<2x256xf32>
    %c0_1 = arith.constant 0 : index
    %c0_2 = arith.constant 0 : index
    %1 = vector.load %arg4[%c0_1, %c0_2] : memref<1x256xf32, #tpu.memory_space<vmem>>, vector<1x256xf32>
    %2 = vector.broadcast %1 : vector<1x256xf32> to vector<2x256xf32>
    %3 = arith.addf %0, %2 : vector<2x256xf32>
    %c0_3 = arith.constant 0 : index
    %c0_4 = arith.constant 0 : index
    %4 = vector.load %arg5[%c0_3, %c0_4] : memref<2x256xf32, #tpu.memory_space<vmem>>, vector<2x256xf32>
    tpu.vector_store %arg5[%c0_3, %c0_4], %3 {strides = array<i32>} : memref<2x256xf32, #tpu.memory_space<vmem>>, vector<2x256xf32>,
    return
  }
  func.func @transform_0(%arg0: i32, %arg1: i32, %arg2: memref<1xi32, #tpu.memory_space<smem>>) -> (i32, i32) {
    %c0_i32 = arith.constant 0 : i32
    return %arg1, %arg0 : i32, i32
  }
  func.func @transform_1(%arg0: i32, %arg1: i32, %arg2: memref<1xi32, #tpu.memory_space<smem>>) -> (i32, i32) {
    %c0_i32 = arith.constant 0 : i32
    %c0_i32_0 = arith.constant 0 : i32
    return %c0_i32, %arg0 : i32, i32
  }
  func.func @transform_2(%arg0: i32, %arg1: i32, %arg2: memref<1xi32, #tpu.memory_space<smem>>) -> (i32, i32) {
    %c0_i32 = arith.constant 0 : i32
    return %arg1, %arg0 : i32, i32
  }
}

</mosaic_0001>

<bundles_post_ra>
// kernel: tpu_custom_call.1
= control target key start
LH: loop header
LB: loop body
LE: loop exit
PB: predicated region body
PF: predicated region fallthrough
CT: control target
= control target key end

     0   :  { %9 = vsyncpa [#allocation5], 0  ;;  %s141_s0 = inlined_call_operand.<no memory space> [shape: s32[1], index: 0, kind: input, shape index: {}]   ;;  %s142_s1 = inlined_call_operand.hbm [shape: f32[2,256], index: 1, kind: input, shape index: {}]   ;;  %s143_s2 = inlined_call_operand.vmem [shape: f32[1,256], index: 2, kind: input, shape index: {}]   ;;  %s144_s3 = inlined_call_operand.hbm [shape: f32[2,256], index: 3, kind: output, shape index: {}]  }
   0x1   :  { %10 = vsyncpa [#allocation6], 0  ;;  %s16_s14 = sshll.u32 %s142_s1, 4  ;;  %s110_s15 = smov [#allocation4]   ;;  %s17_s14 = int_to_ptr.hbm [resolvable:$true] %s16_s14 }
   0x2   :  { %s18_s16 = sshll.u32 %s110_s15, 4  ;;  %s19_s16 = int_to_ptr.vmem [resolvable:$true] %s18_s16 }
   0x3   :  { %21 = dma.hbm_to_vmem [thread:$0]  %s17_s14, 64, %s19_s16, [#allocation5]  }
   0x4   :  { %106 = dma.done.wait [#allocation5], 64  }
   0x5   :  { %107 = vsyncadd [#allocation5], 4294967232  ;;  %v29_v0 = vld [vmem:[%s143_s2] sm:$0x3]  ;;  %vm34_vm0 = vcmask 1041408   ;;  %s111_s18 = smov [#allocation7]  }
   0x6   :  { %v31_v1 = vperm.slane %v29_v0, 0  ;;  %v32_v2 = vperm.slane %v29_v0, 1  ;;  %v28_v3 = vld [vmem:[#allocation4] sm:$0xf]  ;;  %s44_s19 = sshll.u32 %s111_s18, 4  ;;  %s46_s21 = sshll.u32 %s144_s3, 4  ;;  %s45_s19 = int_to_ptr.vmem [resolvable:$true] %s44_s19  ;;  %s47_s21 = int_to_ptr.hbm [resolvable:$true] %s46_s21 }
   0x8   :  { %v33_v4 = vrot.slane %v32_v2, 6 }
   0xa   :  { %v35_v5 = vsel %vm34_vm0, %v31_v1, %v33_v4 }
   0xb   :  { %v37_v6 = vadd.f32 %v35_v5, %v28_v3 }
   0xd   :  { %38 = vst [vmem:[#allocation7] sm:$0xf] %v37_v6 }
   0xe   :  { %49 = dma.vmem_to_hbm [thread:$0]  %s45_s19, 64, %s47_s21, [#allocation6]  }
   0xf   :  { %108 = dma.done.wait [#allocation6], 64  }
  0x10   :  { %109 = vsyncadd [#allocation6], 4294967232 }
  0x11   :  { %54 = vsyncpa [#allocation5], 1 }
  0x12   :  { %55 = vsyncpa [#allocation6], 1 }

</bundles_post_ra>
